<compile_context>
chip_gen: v7x
topology: tpu7x:2x2x1
jax: 0.10.0
libtpu: 0.0.40
codegen_flags: <defaults>
</compile_context>

<pallas_src>
import jax
import jax.numpy as jnp
from jax.experimental import pallas as pl
from jax.experimental.pallas import tpu as pltpu


def critic_kernel(x_ref, w1_ref, b1_ref, w2_ref, b2_ref, w3_ref, b3_ref, out_ref):
    x = x_ref[...]                       # (TB, S) f32
    tb, s = x.shape

    # ---- layer 1: (TB, S) x (S, 128) + b1, ReLU ----------------------------------
    if s < 32:
        # Tiny contraction dim: 4-ish VALU FMAs per output vreg beat a K=s MXU matmul.
        w1 = w1_ref[...]                 # (S, 128)
        h1 = jnp.broadcast_to(b1_ref[...], (tb, w1.shape[1]))
        for k in range(s):               # static unroll (s is a block-shape constant)
            h1 = h1 + x[:, k:k + 1] * w1[k:k + 1, :]
    else:
        h1 = jnp.dot(x, w1_ref[...], preferred_element_type=jnp.float32) + b1_ref[...]
    h1 = jnp.maximum(h1, 0.0)

    # ---- layer 2: (TB, 128) x (128, 256) + b2, ReLU  (real MXU work) --------------
    h2 = jnp.dot(h1, w2_ref[...], preferred_element_type=jnp.float32) + b2_ref[...]
    h2 = jnp.maximum(h2, 0.0)

    # ---- layer 3: N=1 -> VPU multiply + lane reduction, scalar bias from SMEM -----
    v = jnp.sum(h2 * w3_ref[...], axis=-1, keepdims=True) + b3_ref[0, 0]
    out_ref[...] = v.astype(out_ref.dtype)


def critic_forward(state, params):
    """state: (B, state_size) float32. params: dict (see init_critic_params)."""
    B, S = state.shape
    w1, b1, w2, b2, w3, b3 = (
        params["w1"], params["b1"], params["w2"],
        params["b2"], params["w3"], params["b3"],
    )

    # Batch tile: multiple of 8 (f32 sublanes), capped so x/h1/h2 intermediates plus
    # double-buffered state tiles stay far below v7x's 64 MiB VMEM.
    TB = min(512, ((B + 7) // 8) * 8)
    padded_B = pl.cdiv(B, TB) * TB
    if padded_B != B:
        state = jnp.pad(state, ((0, padded_B - B), (0, 0)))

    grid = (padded_B // TB,)

    out = pl.pallas_call(
        critic_kernel,
        out_shape=jax.ShapeDtypeStruct((padded_B, 1), jnp.float32),
        grid=grid,
        in_specs=[
            pl.BlockSpec((TB, S), lambda i: (i, 0)),          # state: streamed per tile
            pl.BlockSpec((S, 128), lambda i: (0, 0)),         # w1: VMEM-resident
            pl.BlockSpec((1, 128), lambda i: (0, 0)),         # b1
            pl.BlockSpec((128, 256), lambda i: (0, 0)),       # w2
            pl.BlockSpec((1, 256), lambda i: (0, 0)),         # b2
            pl.BlockSpec((1, 256), lambda i: (0, 0)),         # w3 (stored as a lane row)
            pl.BlockSpec(memory_space=pltpu.MemorySpace.SMEM),  # b3 scalar
        ],
        out_specs=pl.BlockSpec((TB, 1), lambda i: (i, 0)),
        compiler_params=pltpu.CompilerParams(
            dimension_semantics=("parallel",),
        ),
    )(state, w1, b1, w2, b2, w3, b3)

    return out[:B]


def init_critic_params(state_size, key):
    """Synthetic init matching the PyTorch module's shapes.

    PyTorch nn.Linear weight is (out, in); w1/w2 are stored transposed (in, out) so the
    kernel does x @ W directly.  w3 is stored as (1, 256) (its natural PyTorch layout)
    because layer 3 is computed as a lane reduction, not a matmul.  b3 is a (1,1) scalar.
    """
    k1, k2, k3, k4, k5, k6 = jax.random.split(key, 6)

    def uniform_init(k, shape, fan_in):
        bound = 1.0 / jnp.sqrt(fan_in)
        return jax.random.uniform(k, shape, jnp.float32, -bound, bound)

    return {
        "w1": uniform_init(k1, (state_size, 128), state_size),
        "b1": uniform_init(k2, (1, 128), state_size),
        "w2": uniform_init(k3, (128, 256), 128),
        "b2": uniform_init(k4, (1, 256), 128),
        "w3": uniform_init(k5, (1, 256), 256),
        "b3": uniform_init(k6, (1, 1), 256),
    }


def critic_reference(state, params):
    """Plain-JAX reference for correctness checking."""
    h1 = jnp.maximum(state @ params["w1"] + params["b1"], 0.0)
    h2 = jnp.maximum(h1 @ params["w2"] + params["b2"], 0.0)
    return jnp.sum(h2 * params["w3"], axis=-1, keepdims=True) + params["b3"]


# TODO(synk): Critic.discounted_rewards is a host-side Python loop over a rewards list
# (not part of forward); it has no kernel equivalent and is intentionally not ported.

if __name__ == "__main__":
    key = jax.random.PRNGKey(0)
    k_param, k_state = jax.random.split(key)

    batch = 8
    state_size = 4   # small control-system observation vector
    action_size = 2  # unused by Critic.forward (kept for parity with __init__)

    params = init_critic_params(state_size, k_param)
    state = jax.random.normal(k_state, (batch, state_size), jnp.float32)

    value = critic_forward(state, params)
    value = jax.block_until_ready(value)

    ref = critic_reference(state, params)
    assert value.shape == (batch, 1)
    assert jnp.allclose(value, ref, atol=1e-4, rtol=1e-4), "mismatch vs reference"

    print("KERNEL_OK")
</pallas_src>

<mosaic_0001>
module attributes {stable_mosaic.version = 11 : i64} {
  func.func @critic_kernel(%arg0: i32, %arg1: memref<8x4xf32, #tpu.memory_space<vmem>>, %arg2: memref<4x128xf32, #tpu.memory_space<vmem>>, %arg3: memref<1x128xf32, #tpu.memory_space<vmem>>, %arg4: memref<128x256xf32, #tpu.memory_space<vmem>>, %arg5: memref<1x256xf32, #tpu.memory_space<vmem>>, %arg6: memref<1x256xf32, #tpu.memory_space<vmem>>, %arg7: memref<1x1xf32, #tpu.memory_space<smem>>, %arg8: memref<8x1xf32, #tpu.memory_space<vmem>>) attributes {dimension_semantics = [#tpu.dimension_semantics<parallel>], iteration_bounds = array<i64: 1>, scalar_prefetch = 0 : i64, scratch_operands = 0 : i64, tpu.core_type = #tpu.core_type<tc>, window_params = [{transform_indices = @transform_0, window_bounds = array<i64: 8, 4>}, {pipeline_mode = #tpu.pipeline_mode<synchronous>, transform_indices = @transform_1, window_bounds = array<i64: 4, 128>}, {pipeline_mode = #tpu.pipeline_mode<synchronous>, transform_indices = @transform_2, window_bounds = array<i64: 1, 128>}, {pipeline_mode = #tpu.pipeline_mode<synchronous>, transform_indices = @transform_3, window_bounds = array<i64: 128, 256>}, {pipeline_mode = #tpu.pipeline_mode<synchronous>, transform_indices = @transform_4, window_bounds = array<i64: 1, 256>}, {pipeline_mode = #tpu.pipeline_mode<synchronous>, transform_indices = @transform_5, window_bounds = array<i64: 1, 256>}, {transform_indices = @transform_6, window_bounds = array<i64: 1, 1>}, {transform_indices = @transform_7, window_bounds = array<i64: 8, 1>}]} {
    %c0 = arith.constant 0 : index
    %c0_0 = arith.constant 0 : index
    %0 = vector.load %arg1[%c0, %c0_0] : memref<8x4xf32, #tpu.memory_space<vmem>>, vector<8x4xf32>
    %c0_1 = arith.constant 0 : index
    %c0_2 = arith.constant 0 : index
    %1 = vector.load %arg2[%c0_1, %c0_2] : memref<4x128xf32, #tpu.memory_space<vmem>>, vector<4x128xf32>
    %c0_3 = arith.constant 0 : index
    %c0_4 = arith.constant 0 : index
    %2 = vector.load %arg3[%c0_3, %c0_4] : memref<1x128xf32, #tpu.memory_space<vmem>>, vector<1x128xf32>
    %3 = vector.shape_cast %2 : vector<1x128xf32> to vector<1x128xf32>
    %4 = vector.broadcast %3 : vector<1x128xf32> to vector<8x128xf32>
    %5 = vector.extract_strided_slice %0 {offsets = [0, 0], sizes = [8, 1], strides = [1, 1]} : vector<8x4xf32> to vector<8x1xf32>
    %6 = vector.extract_strided_slice %1 {offsets = [0, 0], sizes = [1, 128], strides = [1, 1]} : vector<4x128xf32> to vector<1x128xf32>
    %7 = vector.broadcast %5 : vector<8x1xf32> to vector<8x128xf32>
    %8 = vector.broadcast %6 : vector<1x128xf32> to vector<8x128xf32>
    %9 = arith.mulf %7, %8 : vector<8x128xf32>
    %10 = arith.addf %4, %9 : vector<8x128xf32>
    %11 = vector.extract_strided_slice %0 {offsets = [0, 1], sizes = [8, 1], strides = [1, 1]} : vector<8x4xf32> to vector<8x1xf32>
    %12 = vector.extract_strided_slice %1 {offsets = [1, 0], sizes = [1, 128], strides = [1, 1]} : vector<4x128xf32> to vector<1x128xf32>
    %13 = vector.broadcast %11 : vector<8x1xf32> to vector<8x128xf32>
    %14 = vector.broadcast %12 : vector<1x128xf32> to vector<8x128xf32>
    %15 = arith.mulf %13, %14 : vector<8x128xf32>
    %16 = arith.addf %10, %15 : vector<8x128xf32>
    %17 = vector.extract_strided_slice %0 {offsets = [0, 2], sizes = [8, 1], strides = [1, 1]} : vector<8x4xf32> to vector<8x1xf32>
    %18 = vector.extract_strided_slice %1 {offsets = [2, 0], sizes = [1, 128], strides = [1, 1]} : vector<4x128xf32> to vector<1x128xf32>
    %19 = vector.broadcast %17 : vector<8x1xf32> to vector<8x128xf32>
    %20 = vector.broadcast %18 : vector<1x128xf32> to vector<8x128xf32>
    %21 = arith.mulf %19, %20 : vector<8x128xf32>
    %22 = arith.addf %16, %21 : vector<8x128xf32>
    %23 = vector.extract_strided_slice %0 {offsets = [0, 3], sizes = [8, 1], strides = [1, 1]} : vector<8x4xf32> to vector<8x1xf32>
    %24 = vector.extract_strided_slice %1 {offsets = [3, 0], sizes = [1, 128], strides = [1, 1]} : vector<4x128xf32> to vector<1x128xf32>
    %25 = vector.broadcast %23 : vector<8x1xf32> to vector<8x128xf32>
    %26 = vector.broadcast %24 : vector<1x128xf32> to vector<8x128xf32>
    %27 = arith.mulf %25, %26 : vector<8x128xf32>
    %28 = arith.addf %22, %27 : vector<8x128xf32>
    %cst = arith.constant 0.000000e+00 : f32
    %29 = vector.broadcast %cst : f32 to vector<8x128xf32>
    %30 = arith.maximumf %28, %29 : vector<8x128xf32>
    %c0_5 = arith.constant 0 : index
    %c0_6 = arith.constant 0 : index
    %31 = vector.load %arg4[%c0_5, %c0_6] : memref<128x256xf32, #tpu.memory_space<vmem>>, vector<128x256xf32>
    %cst_7 = arith.constant dense<0.000000e+00> : vector<8x256xf32>
    %32 = tpu.matmul %30, %31, %cst_7 {dimension_numbers = #tpu.dot_dimension_numbers<[1], [0], [0], [1], [0, 0, 1, 1], [], []>} : vector<8x128xf32>, vector<128x256xf32>, vector<8x256xf32> -> vector<8x256xf32>
    %c0_8 = arith.constant 0 : index
    %c0_9 = arith.constant 0 : index
    %33 = vector.load %arg5[%c0_8, %c0_9] : memref<1x256xf32, #tpu.memory_space<vmem>>, vector<1x256xf32>
    %34 = vector.broadcast %33 : vector<1x256xf32> to vector<8x256xf32>
    %35 = arith.addf %32, %34 : vector<8x256xf32>
    %cst_10 = arith.constant 0.000000e+00 : f32
    %36 = vector.broadcast %cst_10 : f32 to vector<8x256xf32>
    %37 = arith.maximumf %35, %36 : vector<8x256xf32>
    %c0_11 = arith.constant 0 : index
    %c0_12 = arith.constant 0 : index
    %38 = vector.load %arg6[%c0_11, %c0_12] : memref<1x256xf32, #tpu.memory_space<vmem>>, vector<1x256xf32>
    %39 = vector.broadcast %38 : vector<1x256xf32> to vector<8x256xf32>
    %40 = arith.mulf %37, %39 : vector<8x256xf32>
    %cst_13 = arith.constant dense<0.000000e+00> : vector<8xf32>
    %41 = vector.multi_reduction <add>, %40, %cst_13 [1] : vector<8x256xf32> to vector<8xf32>
    %42 = vector.shape_cast %41 : vector<8xf32> to vector<8x1xf32>
    %c0_14 = arith.constant 0 : index
    %c0_15 = arith.constant 0 : index
    %43 = memref.load %arg7[%c0_14, %c0_15] : memref<1x1xf32, #tpu.memory_space<smem>>
    %44 = vector.broadcast %43 : f32 to vector<8x1xf32>
    %45 = arith.addf %42, %44 : vector<8x1xf32>
    %c0_16 = arith.constant 0 : index
    %c0_17 = arith.constant 0 : index
    %46 = vector.load %arg8[%c0_16, %c0_17] : memref<8x1xf32, #tpu.memory_space<vmem>>, vector<8x1xf32>
    tpu.vector_store %arg8[%c0_16, %c0_17], %45 {strides = array<i32>} : memref<8x1xf32, #tpu.memory_space<vmem>>, vector<8x1xf32>,
    return
  }
  func.func @transform_0(%arg0: i32) -> (i32, i32) {
    %c0_i32 = arith.constant 0 : i32
    %c0_i32_0 = arith.constant 0 : i32
    return %arg0, %c0_i32 : i32, i32
  }
  func.func @transform_1(%arg0: i32) -> (i32, i32) {
    %c0_i32 = arith.constant 0 : i32
    %c0_i32_0 = arith.constant 0 : i32
    %c0_i32_1 = arith.constant 0 : i32
    return %c0_i32, %c0_i32_0 : i32, i32
  }
  func.func @transform_2(%arg0: i32) -> (i32, i32) {
    %c0_i32 = arith.constant 0 : i32
    %c0_i32_0 = arith.constant 0 : i32
    %c0_i32_1 = arith.constant 0 : i32
    return %c0_i32, %c0_i32_0 : i32, i32
  }
  func.func @transform_3(%arg0: i32) -> (i32, i32) {
    %c0_i32 = arith.constant 0 : i32
    %c0_i32_0 = arith.constant 0 : i32
    %c0_i32_1 = arith.constant 0 : i32
    return %c0_i32, %c0_i32_0 : i32, i32
  }
  func.func @transform_4(%arg0: i32) -> (i32, i32) {
    %c0_i32 = arith.constant 0 : i32
    %c0_i32_0 = arith.constant 0 : i32
    %c0_i32_1 = arith.constant 0 : i32
    return %c0_i32, %c0_i32_0 : i32, i32
  }
  func.func @transform_5(%arg0: i32) -> (i32, i32) {
    %c0_i32 = arith.constant 0 : i32
    %c0_i32_0 = arith.constant 0 : i32
    %c0_i32_1 = arith.constant 0 : i32
    return %c0_i32, %c0_i32_0 : i32, i32
  }
  func.func @transform_6(%arg0: i32) -> (i32, i32) {
    %c0_i32 = arith.constant 0 : i32
    %c0_i32_0 = arith.constant 0 : i32
    %c0_i32_1 = arith.constant 0 : i32
    return %c0_i32, %c0_i32_0 : i32, i32
  }
  func.func @transform_7(%arg0: i32) -> (i32, i32) {
    %c0_i32 = arith.constant 0 : i32
    %c0_i32_0 = arith.constant 0 : i32
    return %arg0, %c0_i32 : i32, i32
  }
}

</mosaic_0001>

<bundles_post_ra>
// kernel: tpu_custom_call.1
= control target key start
LH: loop header
LB: loop body
LE: loop exit
PB: predicated region body
PF: predicated region fallthrough
CT: control target
= control target key end

     0   :  { %13 = vsyncpa [#allocation4], 0  ;;  %s306_s24 = smov [#allocation3]   ;;  %s387_s0 = inlined_call_operand.vmem [shape: f32[8,4], index: 0, kind: input, shape index: {}]   ;;  %s388_s1 = inlined_call_operand.vmem [shape: f32[4,128], index: 1, kind: input, shape index: {}]   ;;  %s389_s2 = inlined_call_operand.vmem [shape: f32[1,128], index: 2, kind: input, shape index: {}]   ;;  %s390_s3 = inlined_call_operand.hbm [shape: f32[128,256], index: 3, kind: input, shape index: {}]   ;;  %s391_s4 = inlined_call_operand.vmem [shape: f32[1,256], index: 4, kind: input, shape index: {}]   ;;  %s392_s5 = inlined_call_operand.vmem [shape: f32[1,256], index: 5, kind: input, shape index: {}]   ;;  %s393_s6 = inlined_call_operand.<no memory space> [shape: f32[1,1], index: 6, kind: input, shape index: {}]   ;;  %s394_s7 = inlined_call_operand.vmem [shape: f32[8,1], index: 7, kind: output, shape index: {}]  }
   0x1   :  { %s25_s25 = sshll.u32 %s306_s24, 4  ;;  %s282_s28 = scalar_lea.hbm %s390_s3, 4096  ;;  %s26_s25 = int_to_ptr.vmem [resolvable:$true] %s25_s25 }
   0x2   :  { %p283_p0 = scmp.ne.s32.totalorder %s390_s3, %s282_s28  ;;  %p286_p1 = scmp.lt.u32.totalorder %s282_s28, %s390_s3 }
   0x4   :  { %p288_p2 = pnand %p286_p1, %p283_p0 }
   0x6   :  { %291 = shalt.err (!%p288_p2)
}
   0x7   :  { %s292_s10 = scalar_lea.vmem %s26_s25, 4096  ;;  %p297_p4 = scmp.lt.s32.totalorder %s26_s25, %s26_s25 }
   0x8   :  { %p293_p3 = scmp.ne.s32.totalorder %s26_s25, %s292_s10  ;;  %p298_p5 = scmp.lt.s32.totalorder %s292_s10, %s292_s10 }
   0xa   :  { %p299_p6 = por %p298_p5, %p297_p4 }
   0xc   :  { %p300_p7 = pnand %p299_p6, %p293_p3 }
   0xe   :  { %303 = shalt.err (!%p300_p7)
}
   0xf   :  { %s307_s11 = smov 256   ;;  %s308_s12 = smov 16  }
  0x10   :  { %31 = dma.hbm_to_vmem [thread:$0]  %s390_s3, 4096, %s26_s25, [#allocation4], %s307_s11, %s307_s11, %s308_s12  }
  0x11   :  { %304 = dma.done.wait [#allocation4], 4096  }
  0x12   :  { %305 = vsyncadd [#allocation4], 4294963200  ;;  %v309_v0 = vmov 0   ;;  %v310_v1 = vmov 2   ;;  %v41_v2 = vld [vmem:[%s387_s0] sm:$0xff]  ;;  %v93_v3 = vld [vmem:[#allocation3 + $0x8] sm:$0xff]  ;;  %v55_v54 = vlaneseq }
  0x13   :  { %277 = vset.pattern.permute.xlu0 %v309_v0  ;;  %279 = vset.pattern.permute.xlu1 %v310_v1  ;;  %v95_v4 = vld [vmem:[#allocation3 + $0x18] sm:$0xff]  ;;  %v92_v6 = vld [vmem:[#allocation3] sm:$0xff]  ;;  %v94_v7 = vld [vmem:[#allocation3 + $0x10] sm:$0xff]  ;;  %v311_v17 = vmov 1   ;;  %v312_v18 = vmov 3   ;;  %v313_v36 = vmov 0.0  }
  0x14   :  { %52 = vperm.xlu0 %277, %v41_v2   ;;  %72 = vperm.xlu1 %279, %v41_v2   ;;  %v237_v5 = vpack.c.bf16 %v95_v4, %v93_v3  ;;  %v97_v8 = vld [vmem:[#allocation3 + $0x28] sm:$0xff]  ;;  %v239_v9 = vpack.c.bf16 %v94_v7, %v92_v6  ;;  %v99_v10 = vld [vmem:[#allocation3 + $0x38] sm:$0xff]  ;;  %v96_v11 = vld [vmem:[#allocation3 + $0x20] sm:$0xff]  ;;  %v56_v55 = vshrl.u32 %v55_v54, 7  ;;  %vm229_vm0 = vcmask 7168  }
  0x15   :  { %v98_v12 = vld [vmem:[#allocation3 + $0x30] sm:$0xff]  ;;  %v241_v13 = vpack.c.bf16 %v99_v10, %v97_v8  ;;  %v101_v14 = vld [vmem:[#allocation3 + $0x48] sm:$0xff]  ;;  %v103_v15 = vld [vmem:[#allocation3 + $0x58] sm:$0xff]  ;;  %200 = vmatprep.mubr.f32.mxu0 %v313_v36 }
  0x16   :  { %238 = vmatprep.subr.bf16.mxu0 %v237_v5  ;;  %v243_v16 = vpack.c.bf16 %v98_v12, %v96_v11  ;;  %v245_v19 = vpack.c.bf16 %v103_v15, %v101_v14  ;;  %v100_v20 = vld [vmem:[#allocation3 + $0x40] sm:$0xff]  ;;  %v102_v21 = vld [vmem:[#allocation3 + $0x50] sm:$0xff]  ;;  %v105_v22 = vld [vmem:[#allocation3 + $0x68] sm:$0xff]  ;;  %v57_v56 = vsub.s32 0, %v56_v55  ;;  %v67_v59 = vsub.s32 1, %v56_v55 }
  0x17   :  { %240 = vmatpush1.bf16.msra.mxu0 %v239_v9  ;;  %v107_v23 = vld [vmem:[#allocation3 + $0x78] sm:$0xff]  ;;  %v247_v24 = vpack.c.bf16 %v102_v21, %v100_v20  ;;  %v104_v26 = vld [vmem:[#allocation3 + $0x60] sm:$0xff]  ;;  %v106_v27 = vld [vmem:[#allocation3 + $0x70] sm:$0xff]  ;;  %v77_v61 = vsub.s32 2, %v56_v55  ;;  %v87_v63 = vsub.s32 3, %v56_v55 }
  0x18   :  { %278 = vset.pattern.permute.xlu0 %v311_v17  ;;  %280 = vset.pattern.permute.xlu1 %v312_v18  ;;  %v249_v25 = vpack.c.bf16 %v107_v23, %v105_v22  ;;  %v109_v28 = vld [vmem:[#allocation3 + $0x88] sm:$0xff]  ;;  %v111_v29 = vld [vmem:[#allocation3 + $0x98] sm:$0xff]  ;;  %v251_v30 = vpack.c.bf16 %v106_v27, %v104_v26  ;;  %v108_v32 = vld [vmem:[#allocation3 + $0x80] sm:$0xff] }
  0x19   :  { %62 = vperm.xlu0 %278, %v41_v2   ;;  %82 = vperm.xlu1 %280, %v41_v2   ;;  %v253_v31 = vpack.c.bf16 %v111_v29, %v109_v28  ;;  %v110_v33 = vld [vmem:[#allocation3 + $0x90] sm:$0xff]  ;;  %v113_v34 = vld [vmem:[#allocation3 + $0xa8] sm:$0xff]  ;;  %v115_v35 = vld [vmem:[#allocation3 + $0xb8] sm:$0xff] }
  0x1a   :  { %242 = vmatprep.subr.bf16.mxu0 %v241_v13  ;;  %v255_v37 = vpack.c.bf16 %v110_v33, %v108_v32  ;;  %v257_v38 = vpack.c.bf16 %v115_v35, %v113_v34  ;;  %v112_v39 = vld [vmem:[#allocation3 + $0xa0] sm:$0xff]  ;;  %v114_v40 = vld [vmem:[#allocation3 + $0xb0] sm:$0xff]  ;;  %v117_v41 = vld [vmem:[#allocation3 + $0xc8] sm:$0xff] }
  0x1b   :  { %244 = vmatpush1.bf16.msra.mxu0 %v243_v16  ;;  %v119_v42 = vld [vmem:[#allocation3 + $0xd8] sm:$0xff]  ;;  %v259_v43 = vpack.c.bf16 %v114_v40, %v112_v39  ;;  %v116_v45 = vld [vmem:[#allocation3 + $0xc0] sm:$0xff]  ;;  %v118_v46 = vld [vmem:[#allocation3 + $0xd0] sm:$0xff] }
  0x1c   :  { %246 = vmatprep.subr.bf16.mxu0 %v245_v19  ;;  %v261_v44 = vpack.c.bf16 %v119_v42, %v117_v41  ;;  %v121_v47 = vld [vmem:[#allocation3 + $0xe8] sm:$0xff]  ;;  %v123_v48 = vld [vmem:[#allocation3 + $0xf8] sm:$0xff]  ;;  %v263_v49 = vpack.c.bf16 %v118_v46, %v116_v45  ;;  %v120_v51 = vld [vmem:[#allocation3 + $0xe0] sm:$0xff] }
  0x1d   :  { %281 = vset.pattern.permute.xlu0 %v312_v18  ;;  %v265_v50 = vpack.c.bf16 %v123_v48, %v121_v47  ;;  %v122_v52 = vld [vmem:[#allocation3 + $0xf0] sm:$0xff]  ;;  %v42_v57 = vld [vmem:[%s388_s1] sm:$0xf] }
  0x1e   :  { %v267_v53 = vpack.c.bf16 %v122_v52, %v120_v51  ;;  %v58_v58 = vrot.slane %v42_v57, %v57_v56  ;;  %v68_v1 = vrot.slane %v42_v57, %v67_v59  ;;  %v236_v2 = vld [vmem:[%s389_s2] ss:$0 sm:$0xff]  ;;  %v78_v3 = vrot.slane %v42_v57, %v77_v61 }
  0x1f   :  { %248 = vmatpush1.bf16.msra.mxu0 %v247_v24  ;;  %v88_v4 = vrot.slane %v42_v57, %v87_v63  ;;  %v124_v15 = vld [vmem:[%s391_s4] sm:$0x3] }
  0x20   :  { %250 = vmatprep.subr.bf16.mxu0 %v249_v25  ;;  %v129_v16 = vrot.slane %v124_v15, %v57_v56  ;;  %v209_v17 = vld [vmem:[%s392_s5] sm:$0x3]  ;;  %v133_v18 = vrot.slane %v124_v15, %v67_v59 }
  0x21   :  { %v214_v21 = vrot.slane %v209_v17, %v57_v56  ;;  %v218_v24 = vrot.slane %v209_v17, %v67_v59 }
  0x23   :  { %252 = vmatpush1.bf16.msra.mxu0 %v251_v30  ;;  %v227_v30 = vstv %s393_s6 }
  0x24   :  { %254 = vmatprep.subr.bf16.mxu0 %v253_v31 }
  0x27   :  { %256 = vmatpush1.bf16.msra.mxu0 %v255_v37 }
  0x28   :  { %258 = vmatprep.subr.bf16.mxu0 %v257_v38 }
  0x2b   :  { %260 = vmatpush1.bf16.msra.mxu0 %v259_v43 }
  0x2c   :  { %262 = vmatprep.subr.bf16.mxu0 %v261_v44 }
  0x2f   :  { %264 = vmatpush1.bf16.msra.mxu0 %v263_v49 }
  0x30   :  { %266 = vmatprep.subr.bf16.mxu0 %v265_v50 }
  0x33   :  { %268 = vmatpush1.bf16.msra.mxu0 %v267_v53 }
  0x93   :  { %v53_v60 = vpop.permute.xlu0 %52  ;;  %v73_v62 = vpop.permute.xlu1 %72 }
  0x94   :  { %v59_v0 = vmul.f32 %v58_v58, %v53_v60  ;;  %v79_v9 = vmul.f32 %v78_v3, %v73_v62 }
  0x96   :  { %v60_v7 = vadd.f32 %v236_v2, %v59_v0 }
  0x98   :  { %v63_v5 = vpop.permute.xlu0 %62  ;;  %v83_v6 = vpop.permute.xlu1 %82 }
  0x99   :  { %v69_v8 = vmul.f32 %v68_v1, %v63_v5  ;;  %v89_v11 = vmul.f32 %v88_v4, %v83_v6 }
  0x9b   :  { %v70_v10 = vadd.f32 %v69_v8, %v60_v7 }
  0x9d   :  { %v80_v12 = vadd.f32 %v79_v9, %v70_v10 }
  0x9f   :  { %v90_v13 = vadd.f32 %v89_v11, %v80_v12 }
  0xa1   :  { %v91_v14 = vmax.f32 %v90_v13, 0.0 }
  0xa3   :  { %201 = vmatmul.mubr.f32.vlgmr.msra.gmra.mrb[0].mxu0 %v91_v14 }
 0x176   :  { %v202_v19 = vpop.f32.mrb[0].mxu0 }
 0x177   :  { %v203_v20 = vadd.f32 %v202_v19, %v129_v16  ;;  %v204_v22 = vpop.f32.mrb[1].mxu0 }
 0x178   :  { %v205_v23 = vadd.f32 %v204_v22, %v133_v18 }
 0x179   :  { %v207_v25 = vmax.f32 %v203_v20, 0.0 }
 0x17a   :  { %v208_v26 = vmax.f32 %v205_v23, 0.0 }
 0x17b   :  { %v221_v27 = vmul.f32 %v214_v21, %v207_v25 }
 0x17c   :  { %v222_v28 = vmul.f32 %v218_v24, %v208_v26 }
 0x17e   :  { %v223_v29 = vadd.f32 %v222_v28, %v221_v27 }
 0x180   :  { %224 = vadd.xlane.f32.xlu1 %v223_v29 }
 0x20d   :  { %v225_v31 = vpop.xlane.xlu1 %224 }
 0x20e   :  { %v228_v32 = vadd.f32 %v227_v30, %v225_v31 }
 0x210   :  { %230 = vst.msk [vmem:[%s394_s7] sm:$0xff] %vm229_vm0, %v228_v32 }
 0x211   :  { %235 = vsyncpa [#allocation4], 1 }

</bundles_post_ra>
